<compile_context>
chip_gen: v5e
topology: v5e:2x2
jax: 0.10.0
libtpu: 0.0.40
codegen_flags: <defaults>
</compile_context>

<pallas_src>
import functools

import jax
import jax.numpy as jnp
from jax.experimental import pallas as pl
from jax.experimental.pallas import tpu as pltpu

FEAT_PAD = 128  # lane-dense width for intermediate activations / packed weights


def _round_up(n, m):
    return ((n + m - 1) // m) * m


def _cdiv(a, b):
    return (a + b - 1) // b


def _autoencoder_kernel(n_enc, n_dec, in_dim, out_dim,
                        x_ref, w_ref, b_ref, out_ref):
    """One batch tile through the whole network.

    x_ref:   (Bt, in_dim)     f32  unpadded activation tile
    w_ref:   (L, P, P)        f32  stacked padded weights, (in, out), folds applied
    b_ref:   (L, 1, P)        f32  stacked padded biases, folds applied
    out_ref: (Bt, out_dim)    f32  unpadded output tile
    """
    n_layers = n_enc + n_dec

    # Layer 0 (always an encoder layer). The (x - 1) / 4 prologue is folded
    # into w/b at pack time; only the valid in_dim weight rows are used, so the
    # input needs no feature padding at all.
    h = jnp.dot(x_ref[...], w_ref[0, :in_dim, :],
                preferred_element_type=jnp.float32) + b_ref[0]
    h = jnp.maximum(h, 0.0)

    # Remaining encoder layers: Linear -> Dropout(identity) -> ReLU.
    for l in range(1, n_enc):
        h = jnp.dot(h, w_ref[l], preferred_element_type=jnp.float32) + b_ref[l]
        h = jnp.maximum(h, 0.0)

    # Decoder layers except the last: Linear -> Dropout(identity) -> Sigmoid.
    # sigmoid(y) = 0.5*tanh(0.5*y) + 0.5; the 0.5 pre-scale is folded into w/b.
    for l in range(n_enc, n_layers - 1):
        z = jnp.dot(h, w_ref[l], preferred_element_type=jnp.float32) + b_ref[l]
        h = 0.5 * jnp.tanh(z) + 0.5

    # Last decoder layer + epilogue:
    #   clamp(sigmoid(y), 0, 1) * 4 + 1 == 2*tanh(0.5*y) + 3   (clamp is identity)
    last = n_layers - 1
    z = (jnp.dot(h, w_ref[last, :, :out_dim],
                 preferred_element_type=jnp.float32)
         + b_ref[last, :, :out_dim])
    out_ref[...] = (2.0 * jnp.tanh(z) + 3.0).astype(out_ref.dtype)


def pack_autoencoder_params(enc_params, dec_params, feat_pad=FEAT_PAD):
    """One-time packing: transpose to (in, out), fold affines, pad, stack.

    Folds (all exact, done once at pack time):
      * layer 0:      ((x-1)*0.25) @ W = x @ (0.25*W) + (b - 0.25*sum_k W[k,:])
      * decoder layers: 0.5 pre-scale of the tanh-form sigmoid.

    Returns (w_stack f32 (L, P, P), b_stack f32 (L, 1, P)).
    """
    all_params = [(jnp.asarray(w, jnp.float32), jnp.asarray(b, jnp.float32))
                  for (w, b) in list(enc_params) + list(dec_params)]
    n_enc = len(enc_params)
    n_layers = len(all_params)
    w_stack = jnp.zeros((n_layers, feat_pad, feat_pad), jnp.float32)
    b_stack = jnp.zeros((n_layers, 1, feat_pad), jnp.float32)
    for l, (w, b) in enumerate(all_params):
        out_f, in_f = w.shape
        wt = w.T                     # (in, out)
        bb = b
        if l == 0:                   # fold input prologue (x - 1) / 4
            bb = bb - 0.25 * jnp.sum(wt, axis=0)
            wt = 0.25 * wt
        if l >= n_enc:               # decoder: fold sigmoid's 0.5 pre-scale
            wt = 0.5 * wt
            bb = 0.5 * bb
        w_stack = w_stack.at[l, :in_f, :out_f].set(wt)
        b_stack = b_stack.at[l, 0, :out_f].set(bb)
    return w_stack, b_stack


@functools.partial(
    jax.jit,
    static_argnames=("n_enc", "n_dec", "in_dim", "out_dim", "block_batch"))
def autoencoder_forward(x, w_stack, b_stack, *, n_enc, n_dec, in_dim, out_dim,
                        block_batch=4096):
    """x: [batch, in_dim] f32; w_stack/b_stack from pack_autoencoder_params."""
    batch = x.shape[0]
    n_layers, feat_pad, _ = w_stack.shape
    assert n_layers == n_enc + n_dec
    assert x.shape[1] == in_dim

    # Batch tile: multiple of 8 sublanes, as large as possible (amortizes the
    # ~0.35 us/step grid overhead on a purely HBM-bound kernel), but capped so
    # the grid has >= 2 steps when batch >= 16 (keeps both v7x TensorCores busy).
    bt = _round_up(min(block_batch, batch), 8)
    if batch >= 16:
        bt = min(bt, _round_up(_cdiv(batch, 2), 8))
    bt = max(bt, 8)
    grid = (pl.cdiv(batch, bt),)   # no batch padding; ragged last block is fine

    # Honest VMEM budget: double-buffered unpadded I/O tiles, resident packed
    # params (assume 2 buffers), plus f32 (bt, 128) activation temporaries.
    vmem_bytes = (2 * bt * in_dim * 4
                  + 2 * bt * out_dim * 4
                  + 2 * n_layers * feat_pad * (feat_pad + 1) * 4
                  + 6 * bt * feat_pad * 4)
    vmem_limit = int(min(max(2 * vmem_bytes, 8 << 20), 32 << 20))

    kernel = functools.partial(_autoencoder_kernel, n_enc, n_dec, in_dim, out_dim)

    out = pl.pallas_call(
        kernel,
        out_shape=jax.ShapeDtypeStruct((batch, out_dim), jnp.float32),
        grid=grid,
        in_specs=[
            # Unpadded input tile: last dim equals the full array dim -> legal.
            pl.BlockSpec((bt, in_dim), lambda i: (i, 0)),
            # Constant index_map: weights/biases stay VMEM-resident across grid.
            pl.BlockSpec((n_layers, feat_pad, feat_pad), lambda i: (0, 0, 0)),
            pl.BlockSpec((n_layers, 1, feat_pad), lambda i: (0, 0, 0)),
        ],
        # Unpadded output tile: 4x fewer output bytes than 128-padding and no
        # wrapper slice pass (mem-bound win per review; sub-128 store is masked).
        out_specs=pl.BlockSpec((bt, out_dim), lambda i: (i, 0)),
        compiler_params=pltpu.CompilerParams(
            dimension_semantics=("parallel",),
            vmem_limit_bytes=vmem_limit,
        ),
    )(x.astype(jnp.float32), w_stack, b_stack)

    return out


def _init_linear(key, in_f, out_f):
    """Deterministic PyTorch-style nn.Linear init: U(-1/sqrt(in), 1/sqrt(in))."""
    kw, kb = jax.random.split(key)
    bound = 1.0 / float(jnp.sqrt(jnp.asarray(in_f, jnp.float32)))
    w = jax.random.uniform(kw, (out_f, in_f), jnp.float32, -bound, bound)
    b = jax.random.uniform(kb, (out_f,), jnp.float32, -bound, bound)
    return w, b


def build_autoencoder_params(key, hidden):
    n_layers = len(hidden) - 1
    keys = jax.random.split(key, 2 * n_layers)
    enc_params = []
    for i in range(n_layers):
        enc_params.append(_init_linear(keys[i], hidden[i], hidden[i + 1]))
    dec_params = []
    for j, i in enumerate(range(n_layers, 0, -1)):
        dec_params.append(_init_linear(keys[n_layers + j], hidden[i], hidden[i - 1]))
    return enc_params, dec_params


def autoencoder_reference(x, enc_params, dec_params):
    """Pure-JAX f32 reference mirroring the PyTorch module (eval mode)."""
    h = (x - 1.0) / 4.0
    for w, b in enc_params:
        h = jnp.maximum(h @ w.T + b, 0.0)
    for w, b in dec_params:
        h = jax.nn.sigmoid(h @ w.T + b)
    h = jnp.clip(h, 0.0, 1.0)
    return h * 4.0 + 1.0


if __name__ == "__main__":
    key = jax.random.PRNGKey(0)
    hidden = [32, 16, 8]          # AutoEncoder(hidden=[32, 16, 8])
    batch = 8

    k_params, k_x = jax.random.split(key)
    enc_params, dec_params = build_autoencoder_params(k_params, hidden)
    w_stack, b_stack = pack_autoencoder_params(enc_params, dec_params)

    # Inputs roughly in the module's expected [1, 5] rating-like range.
    x = jax.random.uniform(k_x, (batch, hidden[0]), jnp.float32, 1.0, 5.0)

    out = autoencoder_forward(
        x, w_stack, b_stack,
        n_enc=len(enc_params), n_dec=len(dec_params),
        in_dim=hidden[0], out_dim=hidden[0])
    out = jax.block_until_ready(out)

    ref = autoencoder_reference(x, enc_params, dec_params)

    assert out.shape == (batch, hidden[0]), out.shape
    assert float(jnp.min(out)) >= 1.0 and float(jnp.max(out)) <= 5.0
    max_err = float(jnp.max(jnp.abs(out - ref)))
    assert max_err < 1e-2, f"max abs error vs f32 reference: {max_err}"
    print("KERNEL_OK")
</pallas_src>

<mosaic_0001>
module attributes {stable_mosaic.version = 11 : i64} {
  func.func @_autoencoder_kernel(%arg0: i32, %arg1: memref<8x32xf32, #tpu.memory_space<vmem>>, %arg2: memref<4x128x128xf32, #tpu.memory_space<vmem>>, %arg3: memref<4x1x128xf32, #tpu.memory_space<vmem>>, %arg4: memref<8x32xf32, #tpu.memory_space<vmem>>) attributes {dimension_semantics = [#tpu.dimension_semantics<parallel>], iteration_bounds = array<i64: 1>, scalar_prefetch = 0 : i64, scratch_operands = 0 : i64, tpu.core_type = #tpu.core_type<tc>, window_params = [{transform_indices = @transform_0, window_bounds = array<i64: 8, 32>}, {pipeline_mode = #tpu.pipeline_mode<synchronous>, transform_indices = @transform_1, window_bounds = array<i64: 4, 128, 128>}, {pipeline_mode = #tpu.pipeline_mode<synchronous>, transform_indices = @transform_2, window_bounds = array<i64: 4, 1, 128>}, {transform_indices = @transform_3, window_bounds = array<i64: 8, 32>}]} {
    %c0 = arith.constant 0 : index
    %c0_0 = arith.constant 0 : index
    %0 = vector.load %arg1[%c0, %c0_0] : memref<8x32xf32, #tpu.memory_space<vmem>>, vector<8x32xf32>
    %c0_1 = arith.constant 0 : index
    %c0_2 = arith.constant 0 : index
    %c0_3 = arith.constant 0 : index
    %1 = vector.load %arg2[%c0_1, %c0_2, %c0_3] : memref<4x128x128xf32, #tpu.memory_space<vmem>>, vector<1x32x128xf32>
    %2 = vector.shape_cast %1 : vector<1x32x128xf32> to vector<32x128xf32>
    %cst = arith.constant dense<0.000000e+00> : vector<8x128xf32>
    %3 = tpu.matmul %0, %2, %cst {dimension_numbers = #tpu.dot_dimension_numbers<[1], [0], [0], [1], [0, 0, 1, 1], [], []>} : vector<8x32xf32>, vector<32x128xf32>, vector<8x128xf32> -> vector<8x128xf32>
    %c0_4 = arith.constant 0 : index
    %c0_5 = arith.constant 0 : index
    %c0_6 = arith.constant 0 : index
    %4 = vector.load %arg3[%c0_4, %c0_5, %c0_6] : memref<4x1x128xf32, #tpu.memory_space<vmem>>, vector<1x1x128xf32>
    %5 = vector.shape_cast %4 : vector<1x1x128xf32> to vector<1x128xf32>
    %6 = vector.broadcast %5 : vector<1x128xf32> to vector<8x128xf32>
    %7 = arith.addf %3, %6 : vector<8x128xf32>
    %cst_7 = arith.constant 0.000000e+00 : f32
    %8 = vector.broadcast %cst_7 : f32 to vector<8x128xf32>
    %9 = arith.maximumf %7, %8 : vector<8x128xf32>
    %c1 = arith.constant 1 : index
    %c0_8 = arith.constant 0 : index
    %c0_9 = arith.constant 0 : index
    %10 = vector.load %arg2[%c1, %c0_8, %c0_9] : memref<4x128x128xf32, #tpu.memory_space<vmem>>, vector<1x128x128xf32>
    %11 = vector.shape_cast %10 : vector<1x128x128xf32> to vector<128x128xf32>
    %cst_10 = arith.constant dense<0.000000e+00> : vector<8x128xf32>
    %12 = tpu.matmul %9, %11, %cst_10 {dimension_numbers = #tpu.dot_dimension_numbers<[1], [0], [0], [1], [0, 0, 1, 1], [], []>} : vector<8x128xf32>, vector<128x128xf32>, vector<8x128xf32> -> vector<8x128xf32>
    %c1_11 = arith.constant 1 : index
    %c0_12 = arith.constant 0 : index
    %c0_13 = arith.constant 0 : index
    %13 = vector.load %arg3[%c1_11, %c0_12, %c0_13] : memref<4x1x128xf32, #tpu.memory_space<vmem>>, vector<1x1x128xf32>
    %14 = vector.shape_cast %13 : vector<1x1x128xf32> to vector<1x128xf32>
    %15 = vector.broadcast %14 : vector<1x128xf32> to vector<8x128xf32>
    %16 = arith.addf %12, %15 : vector<8x128xf32>
    %cst_14 = arith.constant 0.000000e+00 : f32
    %17 = vector.broadcast %cst_14 : f32 to vector<8x128xf32>
    %18 = arith.maximumf %16, %17 : vector<8x128xf32>
    %c2 = arith.constant 2 : index
    %c0_15 = arith.constant 0 : index
    %c0_16 = arith.constant 0 : index
    %19 = vector.load %arg2[%c2, %c0_15, %c0_16] : memref<4x128x128xf32, #tpu.memory_space<vmem>>, vector<1x128x128xf32>
    %20 = vector.shape_cast %19 : vector<1x128x128xf32> to vector<128x128xf32>
    %cst_17 = arith.constant dense<0.000000e+00> : vector<8x128xf32>
    %21 = tpu.matmul %18, %20, %cst_17 {dimension_numbers = #tpu.dot_dimension_numbers<[1], [0], [0], [1], [0, 0, 1, 1], [], []>} : vector<8x128xf32>, vector<128x128xf32>, vector<8x128xf32> -> vector<8x128xf32>
    %c2_18 = arith.constant 2 : index
    %c0_19 = arith.constant 0 : index
    %c0_20 = arith.constant 0 : index
    %22 = vector.load %arg3[%c2_18, %c0_19, %c0_20] : memref<4x1x128xf32, #tpu.memory_space<vmem>>, vector<1x1x128xf32>
    %23 = vector.shape_cast %22 : vector<1x1x128xf32> to vector<1x128xf32>
    %24 = vector.broadcast %23 : vector<1x128xf32> to vector<8x128xf32>
    %25 = arith.addf %21, %24 : vector<8x128xf32>
    %26 = math.tanh %25 : vector<8x128xf32>
    %cst_21 = arith.constant 5.000000e-01 : f32
    %27 = vector.broadcast %cst_21 : f32 to vector<8x128xf32>
    %28 = arith.mulf %27, %26 : vector<8x128xf32>
    %cst_22 = arith.constant 5.000000e-01 : f32
    %29 = vector.broadcast %cst_22 : f32 to vector<8x128xf32>
    %30 = arith.addf %28, %29 : vector<8x128xf32>
    %c3 = arith.constant 3 : index
    %c0_23 = arith.constant 0 : index
    %c0_24 = arith.constant 0 : index
    %31 = vector.load %arg2[%c3, %c0_23, %c0_24] : memref<4x128x128xf32, #tpu.memory_space<vmem>>, vector<1x128x32xf32>
    %32 = vector.shape_cast %31 : vector<1x128x32xf32> to vector<128x32xf32>
    %cst_25 = arith.constant dense<0.000000e+00> : vector<8x32xf32>
    %33 = tpu.matmul %30, %32, %cst_25 {dimension_numbers = #tpu.dot_dimension_numbers<[1], [0], [0], [1], [0, 0, 1, 1], [], []>} : vector<8x128xf32>, vector<128x32xf32>, vector<8x32xf32> -> vector<8x32xf32>
    %c3_26 = arith.constant 3 : index
    %c0_27 = arith.constant 0 : index
    %c0_28 = arith.constant 0 : index
    %34 = vector.load %arg3[%c3_26, %c0_27, %c0_28] : memref<4x1x128xf32, #tpu.memory_space<vmem>>, vector<1x1x32xf32>
    %35 = vector.shape_cast %34 : vector<1x1x32xf32> to vector<1x32xf32>
    %36 = vector.broadcast %35 : vector<1x32xf32> to vector<8x32xf32>
    %37 = arith.addf %33, %36 : vector<8x32xf32>
    %38 = math.tanh %37 : vector<8x32xf32>
    %cst_29 = arith.constant 2.000000e+00 : f32
    %39 = vector.broadcast %cst_29 : f32 to vector<8x32xf32>
    %40 = arith.mulf %39, %38 : vector<8x32xf32>
    %cst_30 = arith.constant 3.000000e+00 : f32
    %41 = vector.broadcast %cst_30 : f32 to vector<8x32xf32>
    %42 = arith.addf %40, %41 : vector<8x32xf32>
    %c0_31 = arith.constant 0 : index
    %c0_32 = arith.constant 0 : index
    %43 = vector.load %arg4[%c0_31, %c0_32] : memref<8x32xf32, #tpu.memory_space<vmem>>, vector<8x32xf32>
    tpu.vector_store %arg4[%c0_31, %c0_32], %42 {strides = array<i32>} : memref<8x32xf32, #tpu.memory_space<vmem>>, vector<8x32xf32>,
    return
  }
  func.func @transform_0(%arg0: i32) -> (i32, i32) {
    %c0_i32 = arith.constant 0 : i32
    %c0_i32_0 = arith.constant 0 : i32
    return %arg0, %c0_i32 : i32, i32
  }
  func.func @transform_1(%arg0: i32) -> (i32, i32, i32) {
    %c0_i32 = arith.constant 0 : i32
    %c0_i32_0 = arith.constant 0 : i32
    %c0_i32_1 = arith.constant 0 : i32
    %c0_i32_2 = arith.constant 0 : i32
    return %c0_i32, %c0_i32_0, %c0_i32_1 : i32, i32, i32
  }
  func.func @transform_2(%arg0: i32) -> (i32, i32, i32) {
    %c0_i32 = arith.constant 0 : i32
    %c0_i32_0 = arith.constant 0 : i32
    %c0_i32_1 = arith.constant 0 : i32
    %c0_i32_2 = arith.constant 0 : i32
    return %c0_i32, %c0_i32_0, %c0_i32_1 : i32, i32, i32
  }
  func.func @transform_3(%arg0: i32) -> (i32, i32) {
    %c0_i32 = arith.constant 0 : i32
    %c0_i32_0 = arith.constant 0 : i32
    return %arg0, %c0_i32 : i32, i32
  }
}

</mosaic_0001>

<bundles_post_ra>
// kernel: autoencoder_forward.1
= control target key start
LH: loop header
LB: loop body
LE: loop exit
PB: predicated region body
PF: predicated region fallthrough
CT: control target
= control target key end

     0   :  { %8 = vsyncpa [#allocation3], 0  ;;  %s407_s0 = inlined_call_operand.hbm [shape: f32[8,32], index: 0, kind: input, shape index: {}]   ;;  %s408_s1 = inlined_call_operand.hbm [shape: f32[4,128,128], index: 1, kind: input, shape index: {}]   ;;  %s409_s2 = inlined_call_operand.hbm [shape: f32[4,1,128], index: 2, kind: input, shape index: {}]   ;;  %s410_s3 = inlined_call_operand.hbm [shape: f32[8,32], index: 3, kind: output, shape index: {}]  }
   0x1   :  { %9 = vsyncpa [#allocation6], 0  ;;  %s26_s14 = sshll.u32 %s408_s1, 4  ;;  %s27_s14 = int_to_ptr.hbm [resolvable:$true] %s26_s14 }
   0x2   :  { %10 = vsyncpa [#allocation4], 0  ;;  %s365_s15 = smov [#allocation5]   ;;  %s16_s19 = sshll.u32 %s407_s0, 4  ;;  %s17_s19 = int_to_ptr.hbm [resolvable:$true] %s16_s19 }
   0x3   :  { %s28_s16 = sshll.u32 %s365_s15, 4  ;;  %s366_s20 = smov 128   ;;  %s29_s16 = int_to_ptr.vmem [resolvable:$true] %s28_s16 }
   0x4   :  { %s367_s21 = smov 8   ;;  %s368_s22 = smov [#allocation2]  }
   0x5   :  { %34 = dma.hbm_to_vmem [thread:$0]  %s27_s14, 8192, %s29_s16, [#allocation6], %s366_s20, %s366_s20, %s367_s21  }
   0x6   :  { %s18_s23 = sshll.u32 %s368_s22, 4  ;;  %s39_s26 = sshll.u32 %s409_s2, 4  ;;  %s19_s23 = int_to_ptr.vmem [resolvable:$true] %s18_s23  ;;  %s40_s26 = int_to_ptr.hbm [resolvable:$true] %s39_s26 }
   0x7   :  { %21 = dma.hbm_to_vmem [thread:$0]  %s17_s19, 128, %s19_s23, [#allocation3]  }
   0x8   :  { %s369_s1 = smov [#allocation7]   ;;  %s370_s28 = smov 16  }
   0x9   :  { %s41_s27 = sshll.u32 %s369_s1, 4  ;;  %s371_s29 = smov 1   ;;  %s42_s27 = int_to_ptr.vmem [resolvable:$true] %s41_s27 }
   0xa   :  { %47 = dma.hbm_to_vmem [thread:$0]  %s40_s26, 64, %s42_s27, [#allocation6], %s370_s28, %s370_s28, %s371_s29  }
   0xb   :  { %359 = dma.done.wait [#allocation3], 128  }
   0xc   :  { %360 = vsyncadd [#allocation3], 4294967168 }
   0xd   :  { %361 = dma.done.wait [#allocation6], 8256  }
   0xe   :  { %362 = vsyncadd [#allocation6], 4294959040  ;;  %v64_v0 = vld [vmem:[#allocation5 + $0x18] sm:$0xff]  ;;  %v63_v1 = vld [vmem:[#allocation5 + $0x10] sm:$0xff]  ;;  %vm69_vm0 = vcmask 261120   ;;  %s372_s0 = smov [#allocation8]  }
   0xf   :  { %85 = vmatpush.msra.mxu0 %v64_v0  ;;  %v110_v2 = vld [vmem:[#allocation5 + $0xf8] sm:$0xff]  ;;  %v62_v3 = vld [vmem:[#allocation5 + $0x8] sm:$0xff]  ;;  %v109_v4 = vld [vmem:[#allocation5 + $0xf0] sm:$0xff]  ;;  %s233_s2 = sshll.u32 %s372_s0, 4  ;;  %s235_s5 = sshll.u32 %s410_s3, 4  ;;  %s234_s2 = int_to_ptr.vmem [resolvable:$true] %s233_s2  ;;  %s236_s5 = int_to_ptr.hbm [resolvable:$true] %s235_s5 }
  0x10   :  { %116 = vmatpush.msra.mxu1 %v110_v2  ;;  %v108_v5 = vld [vmem:[#allocation5 + $0xe8] sm:$0xff]  ;;  %v61_v6 = vld [vmem:[#allocation5] sm:$0xff]  ;;  %v60_v7 = vld [vmem:[#allocation2] sm:$0xff] }
  0x11   :  { %86 = vmatpush.msra.mxu0 %v63_v1  ;;  %v107_v8 = vld [vmem:[#allocation5 + $0xe0] sm:$0xff]  ;;  %v106_v9 = vld [vmem:[#allocation5 + $0xd8] sm:$0xff]  ;;  %v105_v10 = vld [vmem:[#allocation5 + $0xd0] sm:$0xff] }
  0x12   :  { %117 = vmatpush.msra.mxu1 %v109_v4  ;;  %v104_v11 = vld [vmem:[#allocation5 + $0xc8] sm:$0xff]  ;;  %v103_v12 = vld [vmem:[#allocation5 + $0xc0] sm:$0xff]  ;;  %v102_v13 = vld [vmem:[#allocation5 + $0xb8] sm:$0xff] }
  0x13   :  { %87 = vmatpush.msra.mxu0 %v62_v3  ;;  %v101_v14 = vld [vmem:[#allocation5 + $0xb0] sm:$0xff]  ;;  %v100_v15 = vld [vmem:[#allocation5 + $0xa8] sm:$0xff]  ;;  %v99_v16 = vld [vmem:[#allocation5 + $0xa0] sm:$0xff] }
  0x14   :  { %118 = vmatpush.msra.mxu1 %v108_v5  ;;  %v98_v17 = vld [vmem:[#allocation5 + $0x98] sm:$0xff]  ;;  %v97_v18 = vld [vmem:[#allocation5 + $0x90] sm:$0xff]  ;;  %v96_v19 = vld [vmem:[#allocation5 + $0x88] sm:$0xff] }
  0x15   :  { %88 = vmatpush.msra.mxu0 %v61_v6  ;;  %v95_v20 = vld [vmem:[#allocation5 + $0x80] sm:$0xff]  ;;  %v153_v21 = vld [vmem:[#allocation5 + $0x178] sm:$0xff]  ;;  %v152_v22 = vld [vmem:[#allocation5 + $0x170] sm:$0xff] }
  0x16   :  { %246 = vmatmul.msk.f32.vlgmr.msra.gmra.mxu0 %vm69_vm0, %v60_v7  ;;  %119 = vmatpush.msra.mxu1 %v107_v8  ;;  %v151_v23 = vld [vmem:[#allocation5 + $0x168] sm:$0xff]  ;;  %v150_v24 = vld [vmem:[#allocation5 + $0x160] sm:$0xff]  ;;  %v149_v25 = vld [vmem:[#allocation5 + $0x158] sm:$0xff] }
  0x17   :  { %159 = vmatpush.msra.mxu2 %v153_v21  ;;  %v148_v26 = vld [vmem:[#allocation5 + $0x150] sm:$0xff]  ;;  %v147_v27 = vld [vmem:[#allocation5 + $0x148] sm:$0xff]  ;;  %v146_v28 = vld [vmem:[#allocation5 + $0x140] sm:$0xff] }
  0x18   :  { %120 = vmatpush.msra.mxu1 %v106_v9  ;;  %v145_v29 = vld [vmem:[#allocation5 + $0x138] sm:$0xff]  ;;  %v144_v30 = vld [vmem:[#allocation5 + $0x130] sm:$0xff]  ;;  %v143_v31 = vld [vmem:[#allocation5 + $0x128] sm:$0xff] }
  0x19   :  { %160 = vmatpush.msra.mxu2 %v152_v22  ;;  %v142_v32 = vld [vmem:[#allocation5 + $0x120] sm:$0xff]  ;;  %v141_v33 = vld [vmem:[#allocation5 + $0x118] sm:$0xff]  ;;  %v140_v38 = vld [vmem:[#allocation5 + $0x110] sm:$0xff] }
  0x1a   :  { %121 = vmatpush.msra.mxu1 %v105_v10  ;;  %v255_v34 = vld [vmem:[#allocation7] ss:$0 sm:$0xff]  ;;  %v139_v39 = vld [vmem:[#allocation5 + $0x108] sm:$0xff]  ;;  %v198_v41 = vld [vmem:[#allocation5 + $0x1f8] sm:$0xff] }
  0x1b   :  { %161 = vmatpush.msra.mxu2 %v151_v23  ;;  %v138_v40 = vld [vmem:[#allocation5 + $0x100] sm:$0xff]  ;;  %v197_v42 = vld [vmem:[#allocation5 + $0x1f0] sm:$0xff]  ;;  %204 = vmatpush.msra.mxu3 %v198_v41  ;;  %v196_v43 = vld [vmem:[#allocation5 + $0x1e8] sm:$0xff] }
  0x1c   :  { %122 = vmatpush.msra.mxu1 %v104_v11  ;;  %v195_v44 = vld [vmem:[#allocation5 + $0x1e0] sm:$0xff]  ;;  %v194_v45 = vld [vmem:[#allocation5 + $0x1d8] sm:$0xff]  ;;  %v193_v46 = vld [vmem:[#allocation5 + $0x1d0] sm:$0xff] }
  0x1d   :  { %162 = vmatpush.msra.mxu2 %v150_v24  ;;  %205 = vmatpush.msra.mxu3 %v197_v42  ;;  %v192_v47 = vld [vmem:[#allocation5 + $0x1c8] sm:$0xff]  ;;  %v191_v48 = vld [vmem:[#allocation5 + $0x1c0] sm:$0xff]  ;;  %v190_v49 = vld [vmem:[#allocation5 + $0x1b8] sm:$0xff] }
  0x1e   :  { %123 = vmatpush.msra.mxu1 %v103_v12  ;;  %v256_v50 = vld [vmem:[#allocation7 + $0x1] ss:$0 sm:$0xff]  ;;  %v189_v54 = vld [vmem:[#allocation5 + $0x1b0] sm:$0xff]  ;;  %v188_v55 = vld [vmem:[#allocation5 + $0x1a8] sm:$0xff] }
  0x1f   :  { %163 = vmatpush.msra.mxu2 %v149_v25  ;;  %206 = vmatpush.msra.mxu3 %v196_v43  ;;  %v187_v56 = vld [vmem:[#allocation5 + $0x1a0] sm:$0xff]  ;;  %v186_v57 = vld [vmem:[#allocation5 + $0x198] sm:$0xff]  ;;  %v185_v58 = vld [vmem:[#allocation5 + $0x190] sm:$0xff] }
  0x20   :  { %124 = vmatpush.msra.mxu1 %v102_v13  ;;  %v184_v59 = vld [vmem:[#allocation5 + $0x188] sm:$0xff]  ;;  %v183_v60 = vld [vmem:[#allocation5 + $0x180] sm:$0xff] }
  0x21   :  { %164 = vmatpush.msra.mxu2 %v148_v26  ;;  %207 = vmatpush.msra.mxu3 %v195_v44  ;;  %v257_v61 = vld [vmem:[#allocation7 + $0x2] ss:$0 sm:$0xff]  ;;  %v258_v3 = vld [vmem:[#allocation7 + $0x3] ss:$0 sm:$0xff] }
  0x22   :  { %125 = vmatpush.msra.mxu1 %v101_v14 }
  0x23   :  { %165 = vmatpush.msra.mxu2 %v147_v27  ;;  %208 = vmatpush.msra.mxu3 %v194_v45 }
  0x24   :  { %126 = vmatpush.msra.mxu1 %v100_v15 }
  0x25   :  { %166 = vmatpush.msra.mxu2 %v146_v28  ;;  %209 = vmatpush.msra.mxu3 %v193_v46 }
  0x26   :  { %127 = vmatpush.msra.mxu1 %v99_v16 }
  0x27   :  { %167 = vmatpush.msra.mxu2 %v145_v29  ;;  %210 = vmatpush.msra.mxu3 %v192_v47 }
  0x28   :  { %128 = vmatpush.msra.mxu1 %v98_v17 }
  0x29   :  { %168 = vmatpush.msra.mxu2 %v144_v30  ;;  %211 = vmatpush.msra.mxu3 %v191_v48 }
  0x2a   :  { %129 = vmatpush.msra.mxu1 %v97_v18 }
  0x2b   :  { %169 = vmatpush.msra.mxu2 %v143_v31  ;;  %212 = vmatpush.msra.mxu3 %v190_v49 }
  0x2c   :  { %130 = vmatpush.msra.mxu1 %v96_v19 }
  0x2d   :  { %170 = vmatpush.msra.mxu2 %v142_v32  ;;  %213 = vmatpush.msra.mxu3 %v189_v54 }
  0x2e   :  { %131 = vmatpush.msra.mxu1 %v95_v20 }
  0x2f   :  { %171 = vmatpush.msra.mxu2 %v141_v33  ;;  %214 = vmatpush.msra.mxu3 %v188_v55 }
  0x31   :  { %172 = vmatpush.msra.mxu2 %v140_v38  ;;  %215 = vmatpush.msra.mxu3 %v187_v56 }
  0x33   :  { %173 = vmatpush.msra.mxu2 %v139_v39  ;;  %216 = vmatpush.msra.mxu3 %v186_v57 }
  0x35   :  { %174 = vmatpush.msra.mxu2 %v138_v40  ;;  %217 = vmatpush.msra.mxu3 %v185_v58 }
  0x37   :  { %218 = vmatpush.msra.mxu3 %v184_v59 }
  0x39   :  { %219 = vmatpush.msra.mxu3 %v183_v60 }
  0x93   :  { %v90_v35 = vpop.f32.mrf.mxu0 }
  0x94   :  { %v91_v36 = vadd.f32 %v255_v34, %v90_v35 }
  0x96   :  { %v93_v37 = vmax.f32 %v91_v36, 0.0 }
  0x98   :  { %132 = vmatmul.f32.vlgmr.msra.gmra.mxu1 %v93_v37 }
 0x115   :  { %v133_v51 = vpop.f32.mrf.mxu1 }
 0x116   :  { %v134_v52 = vadd.f32 %v256_v50, %v133_v51 }
 0x118   :  { %v136_v53 = vmax.f32 %v134_v52, 0.0 }
 0x11a   :  { %175 = vmatmul.f32.vlgmr.msra.gmra.mxu2 %v136_v53 }
 0x19d   :  { %v176_v62 = vpop.f32.mrf.mxu2 }
 0x19e   :  { %v177_v63 = vadd.f32 %v257_v61, %v176_v62 }
 0x1a0   :  { %259 = vtanh.f32 %v177_v63 }
 0x1a6   :  { %v260_v0 = vpop.eup %259 }
 0x1a7   :  { %v180_v1 = vmul.f32 0.5, %v260_v0 }
 0x1a9   :  { %v181_v2 = vadd.f32 0.5, %v180_v1 }
 0x1ab   :  { %220 = vmatmul.f32.vlgmr.msra.gmra.mxu3 %v181_v2 }
 0x22e   :  { %v221_v4 = vpop.f32.mrf.mxu3 }
 0x22f   :  { %v222_v5 = vadd.f32 %v258_v3, %v221_v4 }
 0x231   :  { %261 = vtanh.f32 %v222_v5 }
 0x237   :  { %v262_v6 = vpop.eup %261 }
 0x238   :  { %v225_v7 = vmul.f32 2.0, %v262_v6 }
 0x23a   :  { %v226_v8 = vadd.f32 3.0, %v225_v7 }
 0x23c   :  { %227 = vst.msk [vmem:[#allocation8] sm:$0xff] %vm69_vm0, %v226_v8 }
 0x23d   :  { %238 = dma.vmem_to_hbm [thread:$0]  %s234_s2, 128, %s236_s5, [#allocation4]  }
 0x23e   :  { %363 = dma.done.wait [#allocation4], 128  }
 0x23f   :  { %364 = vsyncadd [#allocation4], 4294967168 }
 0x240   :  { %243 = vsyncpa [#allocation3], 1 }
 0x241   :  { %244 = vsyncpa [#allocation6], 1 }
 0x242   :  { %245 = vsyncpa [#allocation4], 1 }

</bundles_post_ra>
